<compile_context>
chip_gen: v7x
topology: tpu7x:2x2x1
jax: 0.10.0
libtpu: 0.0.40
codegen_flags: <defaults>
</compile_context>

<pallas_src>
import jax
import jax.numpy as jnp
from jax.experimental import pallas as pl
from jax.experimental.pallas import tpu as pltpu


def _decoder_loss_kernel(p_ref, q_ref, src_ref, dst_ref, out_ref):
    t = pl.program_id(1)

    @pl.when(t == 0)
    def _init():
        out_ref[...] = jnp.zeros_like(out_ref)

    n_pad = p_ref.shape[1]
    te = src_ref.shape[1]

    # Decode the label from the sign bit of the src id and the validity mask
    # from the out-of-range padding sentinel (decoded id == n_pad).
    se = src_ref[...]                                    # (1, TE) int32
    neg = se < 0
    src = jnp.where(neg, -se - 1, se)                    # node id (or n_pad sentinel)
    sgn = jnp.where(neg, -1.0, 1.0)                      # +1 (y=0) / -1 (y=1)
    valid = (src < n_pad).astype(jnp.float32)            # 0.0 on padded lanes
    dst = dst_ref[...]                                   # (1, TE) int32

    # One-hot MXU gather: d_e = p[src_e] + q[dst_e], lane-dense (1, TE).
    ids = jax.lax.broadcasted_iota(jnp.int32, (n_pad, te), 0)
    oh_src = (ids == src).astype(jnp.float32)            # (n_pad, TE)
    oh_dst = (ids == dst).astype(jnp.float32)            # (n_pad, TE)
    d = (jnp.dot(p_ref[...], oh_src, preferred_element_type=jnp.float32)
         + jnp.dot(q_ref[...], oh_dst, preferred_element_type=jnp.float32))

    # Numerically stable softplus(sgn * d); padded lanes are zeroed by `valid`.
    x = sgn * d
    nll = valid * (jnp.maximum(x, 0.0) + jnp.log(1.0 + jnp.exp(-jnp.abs(x))))

    # Lane-parallel partial sums accumulated across the reduction axis t.
    out_ref[...] += nll[None, :, :]


def decoder_loss(Z, edges, y, W, *, tile_e=2048):
    """Pallas implementation of Decoder.forward (returns scalar mean NLL)."""
    num_nodes, emb = Z.shape
    E = edges.shape[0]
    assert W.shape == (2 * emb, 2)

    # ---- Grid-invariant per-node projections, hoisted out of the kernel ----
    w_diff_src = (W[:emb, 1] - W[:emb, 0]).astype(jnp.float32)
    w_diff_dst = (W[emb:, 1] - W[emb:, 0]).astype(jnp.float32)
    p = Z.astype(jnp.float32) @ w_diff_src                # (num_nodes,)
    q = Z.astype(jnp.float32) @ w_diff_dst                # (num_nodes,)

    # Pad the node dim to a multiple of 128 (MXU / lane alignment).
    n_pad = max(128, pl.cdiv(num_nodes, 128) * 128)
    p = jnp.pad(p, (0, n_pad - num_nodes)).reshape(1, n_pad)
    q = jnp.pad(q, (0, n_pad - num_nodes)).reshape(1, n_pad)

    # ---- Edge-stream tiling -------------------------------------------------
    tile = max(128, (tile_e // 128) * 128)
    tile = min(tile, pl.cdiv(E, 128) * 128)
    num_tiles = pl.cdiv(E, tile)
    num_splits = 2                                        # unconditional megacore split
    tiles_per_split = pl.cdiv(num_tiles, num_splits)
    e_pad = num_splits * tiles_per_split * tile
    pad = e_pad - E

    src = edges[:, 0].astype(jnp.int32)
    dst = edges[:, 1].astype(jnp.int32)
    yi = y.astype(jnp.int32)
    # Fold the label into the sign bit of the src id:  y==1 -> -(src+1).
    src_enc = jnp.where(yi == 1, -(src + 1), src)
    # Padding sentinel: decoded id == n_pad (>= any real node id) -> masked out.
    src_enc = jnp.pad(src_enc, (0, pad), constant_values=n_pad).reshape(1, e_pad)
    dst_idx = jnp.pad(dst, (0, pad)).reshape(1, e_pad)

    def edge_map(s, t):
        return (0, s * tiles_per_split + t)

    partials = pl.pallas_call(
        _decoder_loss_kernel,
        out_shape=jax.ShapeDtypeStruct((num_splits, 1, tile), jnp.float32),
        grid_spec=pltpu.PrefetchScalarGridSpec(
            num_scalar_prefetch=0,
            grid=(num_splits, tiles_per_split),
            in_specs=[
                pl.BlockSpec((1, n_pad), lambda s, t: (0, 0)),   # p (resident)
                pl.BlockSpec((1, n_pad), lambda s, t: (0, 0)),   # q (resident)
                pl.BlockSpec((1, tile), edge_map),               # sign-encoded src ids
                pl.BlockSpec((1, tile), edge_map),               # dst ids
            ],
            out_specs=pl.BlockSpec((1, 1, tile), lambda s, t: (s, 0, 0)),
        ),
        compiler_params=pltpu.CompilerParams(
            dimension_semantics=("parallel", "arbitrary"),
            vmem_limit_bytes=32 * 1024 * 1024,
        ),
    )(p, q, src_enc, dst_idx)

    # Final cross-lane / cross-core reduction and mean normalization in XLA.
    return jnp.sum(partials) / jnp.float32(E)


def _reference_loss(Z, edges, y, W):
    src = Z[edges[:, 0], :]
    dst = Z[edges[:, 1], :]
    feats = jnp.concatenate([src, dst], axis=1)
    scores = feats @ W
    logp = jax.nn.log_softmax(scores, axis=1)
    return -jnp.mean(jnp.take_along_axis(logp, y[:, None].astype(jnp.int32),
                                         axis=1))


if __name__ == "__main__":
    key = jax.random.PRNGKey(0)
    k_z, k_w, k_e, k_y = jax.random.split(key, 4)

    num_nodes = 32
    emb_size = 16
    num_edges = 64

    Z = jax.random.normal(k_z, (num_nodes, emb_size), dtype=jnp.float32)

    # Xavier-normal init for W (2*emb, 2): std = sqrt(2 / (fan_in + fan_out))
    fan_in, fan_out = 2 * emb_size, 2
    std = (2.0 / (fan_in + fan_out)) ** 0.5
    W = std * jax.random.normal(k_w, (2 * emb_size, 2), dtype=jnp.float32)

    edges = jax.random.randint(k_e, (num_edges, 2), 0, num_nodes, dtype=jnp.int32)
    y = jax.random.randint(k_y, (num_edges,), 0, 2, dtype=jnp.int32)

    loss = decoder_loss(Z, edges, y, W)
    loss = jax.block_until_ready(loss)

    ref = _reference_loss(Z, edges, y, W)
    assert jnp.allclose(loss, ref, rtol=1e-5, atol=1e-5), (loss, ref)

    print("KERNEL_OK")
</pallas_src>

<mosaic_0001>
module attributes {stable_mosaic.version = 11 : i64} {
  func.func @_decoder_loss_kernel(%arg0: i32, %arg1: i32, %arg2: memref<1x128xf32, #tpu.memory_space<vmem>>, %arg3: memref<1x128xf32, #tpu.memory_space<vmem>>, %arg4: memref<1x128xi32, #tpu.memory_space<vmem>>, %arg5: memref<1x128xi32, #tpu.memory_space<vmem>>, %arg6: memref<1x1x128xf32, #tpu.memory_space<vmem>>) attributes {dimension_semantics = [#tpu.dimension_semantics<parallel>, #tpu.dimension_semantics<arbitrary>], iteration_bounds = array<i64: 2, 1>, scalar_prefetch = 0 : i64, scratch_operands = 0 : i64, tpu.core_type = #tpu.core_type<tc>, window_params = [{pipeline_mode = #tpu.pipeline_mode<synchronous>, transform_indices = @transform_0, window_bounds = array<i64: 1, 128>}, {pipeline_mode = #tpu.pipeline_mode<synchronous>, transform_indices = @transform_1, window_bounds = array<i64: 1, 128>}, {transform_indices = @transform_2, window_bounds = array<i64: 1, 128>}, {transform_indices = @transform_3, window_bounds = array<i64: 1, 128>}, {transform_indices = @transform_4, window_bounds = array<i64: 1, 1, 128>}]} {
    %c0_i32 = arith.constant 0 : i32
    %0 = arith.cmpi eq, %arg1, %c0_i32 : i32
    %1 = arith.extui %0 : i1 to i32
    %c0_i32_0 = arith.constant 0 : i32
    %2 = arith.cmpi ne, %1, %c0_i32_0 : i32
    scf.if %2 {
      %cst_22 = arith.constant 0.000000e+00 : f32
      %49 = vector.broadcast %cst_22 : f32 to vector<1x1x128xf32>
      %c0_23 = arith.constant 0 : index
      %c0_24 = arith.constant 0 : index
      %c0_25 = arith.constant 0 : index
      %50 = vector.load %arg6[%c0_23, %c0_24, %c0_25] : memref<1x1x128xf32, #tpu.memory_space<vmem>>, vector<1x1x128xf32>
      tpu.vector_store %arg6[%c0_23, %c0_24, %c0_25], %49 {strides = array<i32>} : memref<1x1x128xf32, #tpu.memory_space<vmem>>, vector<1x1x128xf32>,
    } else {
    }
    %c0 = arith.constant 0 : index
    %c0_1 = arith.constant 0 : index
    %3 = vector.load %arg4[%c0, %c0_1] : memref<1x128xi32, #tpu.memory_space<vmem>>, vector<1x128xi32>
    %c0_i32_2 = arith.constant 0 : i32
    %4 = vector.broadcast %c0_i32_2 : i32 to vector<1x128xi32>
    %5 = arith.cmpi slt, %3, %4 : vector<1x128xi32>
    %c0_i32_3 = arith.constant 0 : i32
    %6 = vector.broadcast %c0_i32_3 : i32 to vector<1x128xi32>
    %7 = arith.subi %6, %3 : vector<1x128xi32>
    %c1_i32 = arith.constant 1 : i32
    %8 = vector.broadcast %c1_i32 : i32 to vector<1x128xi32>
    %9 = arith.subi %7, %8 : vector<1x128xi32>
    %10 = arith.select %5, %9, %3 : vector<1x128xi1>, vector<1x128xi32>
    %cst = arith.constant -1.000000e+00 : f32
    %cst_4 = arith.constant 1.000000e+00 : f32
    %11 = vector.broadcast %cst : f32 to vector<1x128xf32>
    %12 = vector.broadcast %cst_4 : f32 to vector<1x128xf32>
    %13 = arith.select %5, %11, %12 : vector<1x128xi1>, vector<1x128xf32>
    %c128_i32 = arith.constant 128 : i32
    %14 = vector.broadcast %c128_i32 : i32 to vector<1x128xi32>
    %15 = arith.cmpi slt, %10, %14 : vector<1x128xi32>
    %16 = arith.extui %15 : vector<1x128xi1> to vector<1x128xi32>
    %17 = arith.sitofp %16 : vector<1x128xi32> to vector<1x128xf32>
    %c0_5 = arith.constant 0 : index
    %c0_6 = arith.constant 0 : index
    %18 = vector.load %arg5[%c0_5, %c0_6] : memref<1x128xi32, #tpu.memory_space<vmem>>, vector<1x128xi32>
    %19 = tpu.iota {dimensions = array<i32: 0>} : vector<128x128xi32>
    %20 = vector.broadcast %10 : vector<1x128xi32> to vector<128x128xi32>
    %21 = arith.cmpi eq, %19, %20 : vector<128x128xi32>
    %22 = arith.extui %21 : vector<128x128xi1> to vector<128x128xi32>
    %23 = arith.sitofp %22 : vector<128x128xi32> to vector<128x128xf32>
    %24 = vector.broadcast %18 : vector<1x128xi32> to vector<128x128xi32>
    %25 = arith.cmpi eq, %19, %24 : vector<128x128xi32>
    %26 = arith.extui %25 : vector<128x128xi1> to vector<128x128xi32>
    %27 = arith.sitofp %26 : vector<128x128xi32> to vector<128x128xf32>
    %c0_7 = arith.constant 0 : index
    %c0_8 = arith.constant 0 : index
    %28 = vector.load %arg2[%c0_7, %c0_8] : memref<1x128xf32, #tpu.memory_space<vmem>>, vector<1x128xf32>
    %cst_9 = arith.constant dense<0.000000e+00> : vector<1x128xf32>
    %29 = tpu.matmul %28, %23, %cst_9 {dimension_numbers = #tpu.dot_dimension_numbers<[1], [0], [0], [1], [0, 0, 1, 1], [], []>} : vector<1x128xf32>, vector<128x128xf32>, vector<1x128xf32> -> vector<1x128xf32>
    %c0_10 = arith.constant 0 : index
    %c0_11 = arith.constant 0 : index
    %30 = vector.load %arg3[%c0_10, %c0_11] : memref<1x128xf32, #tpu.memory_space<vmem>>, vector<1x128xf32>
    %cst_12 = arith.constant dense<0.000000e+00> : vector<1x128xf32>
    %31 = tpu.matmul %30, %27, %cst_12 {dimension_numbers = #tpu.dot_dimension_numbers<[1], [0], [0], [1], [0, 0, 1, 1], [], []>} : vector<1x128xf32>, vector<128x128xf32>, vector<1x128xf32> -> vector<1x128xf32>
    %32 = arith.addf %29, %31 : vector<1x128xf32>
    %33 = arith.mulf %13, %32 : vector<1x128xf32>
    %cst_13 = arith.constant 0.000000e+00 : f32
    %34 = vector.broadcast %cst_13 : f32 to vector<1x128xf32>
    %35 = arith.maximumf %33, %34 : vector<1x128xf32>
    %36 = math.absf %33 : vector<1x128xf32>
    %cst_14 = arith.constant 0.000000e+00 : f32
    %37 = vector.broadcast %cst_14 : f32 to vector<1x128xf32>
    %38 = arith.subf %37, %36 : vector<1x128xf32>
    %39 = math.exp %38 : vector<1x128xf32>
    %cst_15 = arith.constant 1.000000e+00 : f32
    %40 = vector.broadcast %cst_15 : f32 to vector<1x128xf32>
    %41 = arith.addf %40, %39 : vector<1x128xf32>
    %42 = math.log %41 : vector<1x128xf32>
    %43 = arith.addf %35, %42 : vector<1x128xf32>
    %44 = arith.mulf %17, %43 : vector<1x128xf32>
    %c0_16 = arith.constant 0 : index
    %c0_17 = arith.constant 0 : index
    %c0_18 = arith.constant 0 : index
    %45 = vector.load %arg6[%c0_16, %c0_17, %c0_18] : memref<1x1x128xf32, #tpu.memory_space<vmem>>, vector<1x1x128xf32>
    %46 = vector.shape_cast %44 : vector<1x128xf32> to vector<1x1x128xf32>
    %47 = arith.addf %45, %46 : vector<1x1x128xf32>
    %c0_19 = arith.constant 0 : index
    %c0_20 = arith.constant 0 : index
    %c0_21 = arith.constant 0 : index
    %48 = vector.load %arg6[%c0_19, %c0_20, %c0_21] : memref<1x1x128xf32, #tpu.memory_space<vmem>>, vector<1x1x128xf32>
    tpu.vector_store %arg6[%c0_19, %c0_20, %c0_21], %47 {strides = array<i32>} : memref<1x1x128xf32, #tpu.memory_space<vmem>>, vector<1x1x128xf32>,
    return
  }
  func.func @transform_0(%arg0: i32, %arg1: i32) -> (i32, i32) {
    %c0_i32 = arith.constant 0 : i32
    %c0_i32_0 = arith.constant 0 : i32
    %c0_i32_1 = arith.constant 0 : i32
    return %c0_i32, %c0_i32_0 : i32, i32
  }
  func.func @transform_1(%arg0: i32, %arg1: i32) -> (i32, i32) {
    %c0_i32 = arith.constant 0 : i32
    %c0_i32_0 = arith.constant 0 : i32
    %c0_i32_1 = arith.constant 0 : i32
    return %c0_i32, %c0_i32_0 : i32, i32
  }
  func.func @transform_2(%arg0: i32, %arg1: i32) -> (i32, i32) {
    %c1_i32 = arith.constant 1 : i32
    %0 = arith.muli %arg0, %c1_i32 : i32
    %1 = arith.addi %0, %arg1 : i32
    %c0_i32 = arith.constant 0 : i32
    %c0_i32_0 = arith.constant 0 : i32
    return %c0_i32, %1 : i32, i32
  }
  func.func @transform_3(%arg0: i32, %arg1: i32) -> (i32, i32) {
    %c1_i32 = arith.constant 1 : i32
    %0 = arith.muli %arg0, %c1_i32 : i32
    %1 = arith.addi %0, %arg1 : i32
    %c0_i32 = arith.constant 0 : i32
    %c0_i32_0 = arith.constant 0 : i32
    return %c0_i32, %1 : i32, i32
  }
  func.func @transform_4(%arg0: i32, %arg1: i32) -> (i32, i32, i32) {
    %c0_i32 = arith.constant 0 : i32
    %c0_i32_0 = arith.constant 0 : i32
    %c0_i32_1 = arith.constant 0 : i32
    return %arg0, %c0_i32, %c0_i32_0 : i32, i32, i32
  }
}

</mosaic_0001>

<bundles_post_ra>
// kernel: tpu_custom_call.1
= control target key start
LH: loop header
LB: loop body
LE: loop exit
PB: predicated region body
PF: predicated region fallthrough
CT: control target
= control target key end

     0   :  { %9 = vsyncpa [#allocation3], 0  ;;  %s1348_s0 = inlined_call_operand.hbm [shape: f32[1,128], index: 0, kind: input, shape index: {}]   ;;  %s1349_s1 = inlined_call_operand.vmem [shape: f32[1,128], index: 1, kind: input, shape index: {}]   ;;  %s1350_s2 = inlined_call_operand.vmem [shape: s32[1,256], index: 2, kind: input, shape index: {}]   ;;  %s1351_s3 = inlined_call_operand.vmem [shape: s32[1,256], index: 3, kind: input, shape index: {}]   ;;  %s1352_s4 = inlined_call_operand.hbm [shape: f32[2,1,128], index: 4, kind: output, shape index: {}]  }
   0x1   :  { %10 = vsyncpa [#allocation4], 0 }
   0x2   :  { %12 = vsyncpa [#allocation4 + $0x1], 0  ;;  %s1077_s15 = smov 0   ;;  %s1079_s16 = smov 0  }
   0x3   :  { %s1081_s17 = smov 0   ;;  %s1083_s18 = smov 0  }
   0x4   :  { %s1085_s19 = smov 0   ;;  %s1087_s20 = smov 0  }
   0x5 LB: > { %s628_s21 = sadd.s32 4294967295, %s1043_s20   ;;  %s629_s22 = sadd.s32 4294967294, %s1043_s20   ;;  %s1043_s20 = sphi %s1087_s20, %s18_s20   ;;  %s1039_s19 = sphi %s1085_s19, %s1370_s19   ;;  %s1035_s18 = sphi %s1083_s18, %s1369_s18   ;;  %s1031_s17 = sphi %s1081_s17, %s1368_s17   ;;  %s1027_s16 = sphi %s1079_s16, %s1367_s16   ;;  %s1023_s15 = sphi %s1077_s15, %s1366_s15  }
   0x6   : > { %s30_s23 = sadd.s32 1, %s1039_s19  ;;  %s135_s24 = sadd.s32 1, %s1031_s17 }
   0x7   : > { %p32_p0 = scmp.ge.s32.totalorder %s30_s23, 2  ;;  %p145_p1 = scmp.ne.s32.totalorder %s1031_s17, %s1027_s16 }
   0x8   : > { %p146_p2 = scmp.eq.s32.totalorder %s628_s21, 1  ;;  %p151_p3 = scmp.ne.s32.totalorder %s1027_s16, %s1023_s15 }
   0x9   : > { %s1372_s23 = smov (%p32_p0, %s30_s23), 0  ;;  %p152_p5 = scmp.eq.s32.totalorder %s629_s22, 1 }
   0xa   : > { %p1117_p4 = por %p146_p2, %p145_p1  ;;  %s132_s26 = ssub.s32 %s1039_s19, %s1372_s23 }
   0xb   : > { %p630_p6 = scmp.ge.s32.totalorder %s1043_s20, 1  ;;  %p133_p7 = scmp.eq.s32.totalorder %s132_s26, 0 }
   0xc   : > { %s1357_s25 = scalar_select %p1117_p4, 1, 0 }
   0xd   : > { %p1124_p8 = por %p152_p5, %p151_p3  ;;  %p159_p9 = scmp.lt.s32.totalorder %s1043_s20, 3 }
   0xe   : > { %s1130_s28 = scalar_select %p133_p7, %s1031_s17, %s135_s24  }
   0xf   : > { %s1358_s27 = scalar_select %p1124_p8, 1, 0 }
  0x10   : > { %p1132_p10 = pnand %p630_p6, %p159_p9  ;;  %p1136_p11 = scmp.eq.s32.totalorder %s628_s21, 0 }
  0x11   : > { %s1045_s5 = smov [#allocation2]   ;;  %s933_s10 = scalar_lea.hbm %s1348_s0, 16 }
  0x12   : > { %s1359_s29 = scalar_select %p1132_p10, 1, 0 }
  0x13   : > { %s1360_s30 = scalar_select %p1136_p11, 1, 0 }
  0x14   : > { %p864_p12 = pneg %p1132_p10  ;;  %s172_s6 = sshll.u32 %s1045_s5, 4  ;;  %s173_s6 = int_to_ptr.vmem [resolvable:$true] %s172_s6 }
  0x15   : > { %p934_p0 = scmp.ne.s32.totalorder %s1348_s0, %s933_s10  ;;  %p940_p5 = scmp.lt.u32.totalorder %s933_s10, %s1348_s0 }
  0x16   : > { %p1144_p13 = pnand %p1136_p11, %p864_p12 }
  0x18   : > { %p935_p1 = pneg %p1144_p13 }
  0x1a   : > { %p936_p2 = pnand %p935_p1, %p934_p0 }
  0x1c   : > { %p937_p3 = pneg %p936_p2 }
  0x1e   : > { %p942_p6 = pnand %p940_p5, %p937_p3 }
  0x20   : > { %945 = shalt.err (!%p942_p6)
}
  0x21   : > { %s946_s21 = scalar_lea.vmem %s173_s6, 16  ;;  %s953_s22 = scalar_lea.vmem %s173_s6, 32 }
  0x22   : > { %p947_p7 = scmp.ne.s32.totalorder %s173_s6, %s946_s21  ;;  %p954_p8 = scmp.lt.s32.totalorder %s173_s6, %s173_s6 }
  0x23   : > { %p955_p4 = scmp.lt.s32.totalorder %s953_s22, %s946_s21 }
  0x24   : > { %p949_p9 = pnand %p947_p7, %p935_p1 }
  0x25   : > { %p956_p11 = por %p955_p4, %p954_p8 }
  0x26   : > { %p950_p12 = pneg %p949_p9 }
  0x28   : > { %p957_p10 = pnand %p956_p11, %p950_p12 }
  0x2a   : > { %960 = shalt.err (!%p957_p10)
}
  0x2b   : > { %867 = dma.hbm_to_vmem [thread:$0]  (!%p1144_p13), %s1348_s0, 16, %s173_s6, [#allocation3]  }
  0x2c   : > { %p1362_p0 = scmp.ne.s32.totalorder %s1359_s29, 0 }
  0x2d   : > { %p1363_p2 = scmp.ne.s32.totalorder (!%p1362_p0), %s1360_s30, 0 }
  0x2e   : > { %204 = sbr.rel (%p1362_p0) target bundleno = 368 (0x170), region = 36 }
  0x35   : > { %1014 = dma.done.wait (%p1363_p2), [#allocation3], 16  }
  0x36   : > { %1016 = vsyncadd (%p1363_p2), [#allocation3], 4294967280  ;;  %p233_p4 = scmp.lt.s32.totalorder %s1035_s18, 1  ;;  %v257_v0 = vlaneseq  ;;  %v1046_v1 = vmov 0.0|0.0   ;;  %vm1047_vm0 = vmmov 0   ;;  %v1048_v3 = vmov 0.0  }
  0x37   : > { %809 = vmatprep.subr.bf16.mxu1 %v1046_v1  ;;  %833 = vmatprep.subr.bf16.mxu0 %v1046_v1  ;;  %v1049_v14 = vmov 1.0|1.0   ;;  %v379_v27 = vld [vmem:[%s1349_s1] sm:$0x1]  ;;  %v378_v28 = vld [vmem:[#allocation2] sm:$0x1] }
  0x38   : > { %s234_s5 = scalar_select %p233_p4, %s1035_s18, 1  ;;  %v1174_v2 = vshrl.u32 %v257_v0, 7  ;;  %771 = vmatprep.mubr.msk.f32.mxu1 %vm1047_vm0, %v1048_v3  ;;  %806 = vmatprep.mubr.msk.f32.mxu0 %vm1047_vm0, %v1048_v3  ;;  %v1050_v31 = vmov 1.0  }
  0x39   : > { %s230_s12 = sand.u32 1, %s1027_s16   ;;  %s702_s14 = sshll.u32 %s1035_s18, 4 }
  0x3a   : > { %s235_s6 = scalar_lea.vmem %s1350_s2, %s234_s5  ;;  %s240_s9 = scalar_lea.vmem %s1351_s3, %s234_s5  ;;  %v259_v4 = vadd.s32 8, %v1174_v2  ;;  %v260_v5 = vadd.s32 16, %v1174_v2  ;;  %v261_v6 = vadd.s32 24, %v1174_v2  ;;  %v262_v9 = vadd.s32 32, %v1174_v2 }
  0x3b   : > { %v1187_v7 = vld [vmem:[%s235_s6] sm:$0x1]  ;;  %v263_v11 = vadd.s32 40, %v1174_v2  ;;  %v276_v12 = vsub.s32 0, %v1174_v2  ;;  %v264_v15 = vadd.s32 48, %v1174_v2  ;;  %v265_v17 = vadd.s32 56, %v1174_v2  ;;  %s1298_s26 = scalar_lea.hbm %s1352_s4, %s702_s14 }
  0x3c   : > { %v1189_v8 = vld [vmem:[%s240_s9] ss:$0 sm:$0xff]  ;;  %v249_v10 = vsub.s32 0, %v1187_v7  ;;  %vm248_vm3 = vcmp.lt.s32.totalorder %v1187_v7, 0  ;;  %v266_v19 = vadd.s32 64, %v1174_v2  ;;  %v267_v20 = vadd.s32 72, %v1174_v2 }
  0x3d   : > { %vm330_vm1 = vcmp.eq.s32.totalorder %v1174_v2, %v1189_v8  ;;  %vm331_vm2 = vcmp.eq.s32.totalorder %v259_v4, %v1189_v8  ;;  %vm332_vm5 = vcmp.eq.s32.totalorder %v260_v5, %v1189_v8  ;;  %vm333_vm6 = vcmp.eq.s32.totalorder %v261_v6, %v1189_v8  ;;  %s1284_s13 = scalar_lea.vmem [#allocation5], %s230_s12  ;;  %s535_s5 = scalar_lea.sflag [#allocation4], %s230_s12 }
  0x3e   : > { %vm810_vm4 = vmpackc.low %vm331_vm2, %vm330_vm1  ;;  %v635_v13 = vadd.s32 4294967295, %v249_v10  ;;  %vm334_vm8 = vcmp.eq.s32.totalorder %v262_v9, %v1189_v8  ;;  %vm335_vm9 = vcmp.eq.s32.totalorder %v263_v11, %v1189_v8  ;;  %vm336_vm0 = vcmp.eq.s32.totalorder %v264_v15, %v1189_v8  ;;  %246 = vst [vmem:[%s1284_s13] sm:$0x1] %v1048_v3  ;;  %s547_s21 = sshll.u32 %s1284_s13, 4  ;;  %p1364_p10 = scmp.ne.s32.totalorder %s1357_s25, 0  ;;  %s1300_s21 = int_to_ptr.vmem [resolvable:$true] %s547_s21 }
  0x3f   : > { %811 = vmatpush3.bf16.msk.msra.mxu1 %vm810_vm4, %v1049_v14  ;;  %vm813_vm7 = vmpackc.low %vm333_vm6, %vm332_vm5  ;;  %vm337_vm1 = vcmp.eq.s32.totalorder %v265_v17, %v1189_v8  ;;  %v268_v21 = vadd.s32 80, %v1174_v2  ;;  %v269_v22 = vadd.s32 88, %v1174_v2  ;;  %v270_v23 = vadd.s32 96, %v1174_v2  ;;  %s961_s29 = scalar_lea.vmem %s1300_s21, 16  ;;  %s1051_s18 = smov [#allocation5]  }
  0x40   : > { %812 = vmatprep.subr.bf16.mxu1 %v1046_v1  ;;  %v1207_v16 = vsel %vm248_vm3, %v635_v13, %v1187_v7  ;;  %vm816_vm14 = vmpackc.low %vm335_vm9, %vm334_vm8  ;;  %vm339_vm8 = vcmp.eq.s32.totalorder %v267_v20, %v1189_v8  ;;  %v271_v24 = vadd.s32 104, %v1174_v2  ;;  %v272_v25 = vadd.s32 112, %v1174_v2  ;;  %p962_p8 = scmp.ne.s32.totalorder %s1300_s21, %s961_s29  ;;  %s965_s30 = sshll.u32 %s1051_s18, 4  ;;  %s966_s30 = int_to_ptr.vmem [resolvable:$false] %s965_s30 }
  0x41   : > { %v1213_v18 = vrot.slane %v1207_v16, %v276_v12  ;;  %vm819_vm6 = vmpackc.low %vm337_vm1, %vm336_vm0  ;;  %v273_v26 = vadd.s32 120, %v1174_v2  ;;  %v252_v32 = vsel %vm248_vm3, -1.0, %v1050_v31  ;;  %s967_s6 = scalar_lea.vmem %s966_s30, 32  ;;  %p968_p1 = scmp.lt.s32.totalorder %s1300_s21, %s966_s30 }
  0x42   : > { %p963_p11 = pnand %p962_p8, %p1364_p10  ;;  %p969_p3 = scmp.lt.s32.totalorder %s967_s6, %s961_s29 }
  0x43   : > { %814 = vmatpush3.bf16.msk.msra.mxu1 %vm813_vm7, %v1049_v14  ;;  %vm278_vm10 = vcmp.eq.s32.totalorder %v1174_v2, %v1213_v18  ;;  %vm279_vm11 = vcmp.eq.s32.totalorder %v259_v4, %v1213_v18  ;;  %vm280_vm12 = vcmp.eq.s32.totalorder %v260_v5, %v1213_v18  ;;  %vm281_vm13 = vcmp.eq.s32.totalorder %v261_v6, %v1213_v18 }
  0x44   : > { %815 = vmatprep.subr.bf16.mxu1 %v1046_v1  ;;  %vm834_vm15 = vmpackc.low %vm279_vm11, %vm278_vm10  ;;  %vm282_vm4 = vcmp.eq.s32.totalorder %v262_v9, %v1213_v18  ;;  %vm283_vm5 = vcmp.eq.s32.totalorder %v263_v11, %v1213_v18  ;;  %vm338_vm7 = vcmp.eq.s32.totalorder %v266_v19, %v1189_v8  ;;  %vm284_vm10 = vcmp.eq.s32.totalorder %v264_v15, %v1213_v18  ;;  %p964_p13 = pneg %p963_p11  ;;  %p970_p5 = por %p969_p3, %p968_p1 }
  0x45   : > { %835 = vmatpush3.bf16.msk.msra.mxu0 %vm834_vm15, %v1049_v14  ;;  %vm837_vm2 = vmpackc.low %vm281_vm13, %vm280_vm12  ;;  %vm285_vm11 = vcmp.eq.s32.totalorder %v265_v17, %v1213_v18  ;;  %vm340_vm13 = vcmp.eq.s32.totalorder %v268_v21, %v1189_v8  ;;  %vm286_vm0 = vcmp.eq.s32.totalorder %v266_v19, %v1213_v18  ;;  %vm287_vm1 = vcmp.eq.s32.totalorder %v267_v20, %v1213_v18  ;;  %v531_v47 = vld [vmem:[%s1284_s13] sm:$0x1] }
  0x46   : > { %836 = vmatprep.subr.bf16.mxu0 %v1046_v1  ;;  %vm840_vm9 = vmpackc.low %vm283_vm5, %vm282_vm4  ;;  %vm342_vm4 = vcmp.eq.s32.totalorder %v270_v23, %v1189_v8  ;;  %vm343_vm5 = vcmp.eq.s32.totalorder %v271_v24, %v1189_v8  ;;  %p971_p6 = pnand %p970_p5, %p964_p13 }
  0x47   : > { %817 = vmatpush3.bf16.msk.msra.mxu1 %vm816_vm14, %v1049_v14  ;;  %vm822_vm12 = vmpackc.low %vm339_vm8, %vm338_vm7  ;;  %vm341_vm14 = vcmp.eq.s32.totalorder %v269_v22, %v1189_v8  ;;  %vm288_vm7 = vcmp.eq.s32.totalorder %v268_v21, %v1213_v18  ;;  %vm289_vm8 = vcmp.eq.s32.totalorder %v269_v22, %v1213_v18 }
  0x48   : > { %818 = vmatprep.subr.bf16.mxu1 %v1046_v1  ;;  %vm843_vm15 = vmpackc.low %vm285_vm11, %vm284_vm10  ;;  %vm344_vm10 = vcmp.eq.s32.totalorder %v272_v25, %v1189_v8  ;;  %vm345_vm11 = vcmp.eq.s32.totalorder %v273_v26, %v1189_v8 }
  0x49   : > { %838 = vmatpush3.bf16.msk.msra.mxu0 %vm837_vm2, %v1049_v14  ;;  %vm825_vm2 = vmpackc.low %vm341_vm14, %vm340_vm13  ;;  %vm290_vm13 = vcmp.eq.s32.totalorder %v270_v23, %v1213_v18  ;;  %vm291_vm14 = vcmp.eq.s32.totalorder %v271_v24, %v1213_v18 }
  0x4a   : > { %839 = vmatprep.subr.bf16.mxu0 %v1046_v1 }
  0x4b   : > { %820 = vmatpush3.bf16.msk.msra.mxu1 %vm819_vm6, %v1049_v14  ;;  %vm846_vm6 = vmpackc.low %vm287_vm1, %vm286_vm0  ;;  %vm292_vm1 = vcmp.eq.s32.totalorder %v272_v25, %v1213_v18 }
  0x4c   : > { %821 = vmatprep.subr.bf16.mxu1 %v1046_v1  ;;  %vm852_vm0 = vmpackc.low %vm291_vm14, %vm290_vm13 }
  0x4d   : > { %841 = vmatpush3.bf16.msk.msra.mxu0 %vm840_vm9, %v1049_v14  ;;  %vm828_vm9 = vmpackc.low %vm343_vm5, %vm342_vm4  ;;  %vm253_vm5 = vcmp.lt.s32.totalorder %v1207_v16, 128 }
  0x4e   : > { %842 = vmatprep.subr.bf16.mxu0 %v1046_v1  ;;  %v636_v45 = vsel %vm253_vm5, 1.0, %v1048_v3 }
  0x4f   : > { %823 = vmatpush3.bf16.msk.msra.mxu1 %vm822_vm12, %v1049_v14  ;;  %vm849_vm12 = vmpackc.low %vm289_vm8, %vm288_vm7 }
  0x50   : > { %824 = vmatprep.subr.bf16.mxu1 %v1046_v1 }
  0x51   : > { %844 = vmatpush3.bf16.msk.msra.mxu0 %vm843_vm15, %v1049_v14  ;;  %vm831_vm15 = vmpackc.low %vm345_vm11, %vm344_vm10 }
  0x52   : > { %845 = vmatprep.subr.bf16.mxu0 %v1046_v1 }
  0x53   : > { %826 = vmatpush3.bf16.msk.msra.mxu1 %vm825_vm2, %v1049_v14  ;;  %vm293_vm2 = vcmp.eq.s32.totalorder %v273_v26, %v1213_v18 }
  0x54   : > { %827 = vmatprep.subr.bf16.mxu1 %v1046_v1  ;;  %vm855_vm4 = vmpackc.low %vm293_vm2, %vm292_vm1 }
  0x55   : > { %847 = vmatpush3.bf16.msk.msra.mxu0 %vm846_vm6, %v1049_v14 }
  0x56   : > { %848 = vmatprep.subr.bf16.mxu0 %v1046_v1 }
  0x57   : > { %829 = vmatpush3.bf16.msk.msra.mxu1 %vm828_vm9, %v1049_v14 }
  0x58   : > { %830 = vmatprep.subr.bf16.mxu1 %v1046_v1 }
  0x59   : > { %850 = vmatpush3.bf16.msk.msra.mxu0 %vm849_vm12, %v1049_v14 }
  0x5a   : > { %851 = vmatprep.subr.bf16.mxu0 %v1046_v1 }
  0x5b   : > { %832 = vmatpush3.bf16.msk.msra.mxu1 %vm831_vm15, %v1049_v14 }
  0x5d   : > { %853 = vmatpush3.bf16.msk.msra.mxu0 %vm852_vm0, %v1049_v14 }
  0x5e   : > { %772 = vmatmul.mubr.f32.vlgmr.msra.gmra.mrb[0].mxu1 %v379_v27  ;;  %854 = vmatprep.subr.bf16.mxu0 %v1046_v1 }
  0x61   : > { %856 = vmatpush3.bf16.msk.msra.mxu0 %vm855_vm4, %v1049_v14 }
  0x64   : > { %807 = vmatmul.mubr.f32.vlgmr.msra.gmra.mrb[0].mxu0 %v378_v28 }
 0x131   : > { %v446_v29 = vpop.f32.mrb[0].mxu1 }
 0x132   : > { %v773_v30 = vpop.f32.mrb[1].mxu1 }
 0x137   : > { %v516_v33 = vpop.f32.mrb[0].mxu0 }
 0x138   : > { %v517_v34 = vadd.f32 %v516_v33, %v446_v29  ;;  %v808_v35 = vpop.f32.mrb[1].mxu0 }
 0x13a   : > { %v520_v36 = vmul.f32 %v517_v34, %v252_v32 }
 0x13c   : > { %v522_v37 = vand.u32 2147483647, %v520_v36  ;;  %v521_v43 = vmax.f32 %v520_v36, 0.0 }
 0x13e   : > { %v523_v38 = vsub.f32 0.0, %v522_v37 }
 0x140   : > { %v524_v39 = vmul.f32 1.442695, %v523_v38 }
 0x142   : > { %929 = vpow2.f32 %v524_v39 }
 0x14c   : > { %v930_v40 = vpop.eup %929 }
 0x14d   : > { %v526_v41 = vadd.f32 1.0, %v930_v40 }
 0x14f   : > { %931 = vlog2.f32 %v526_v41 }
 0x159   : > { %v932_v42 = vpop.eup %931 }
 0x15a   : > { %v528_v44 = vmul.f32 0.6931472, %v932_v42 }
 0x15c   : > { %v529_v46 = vadd.f32 %v528_v44, %v521_v43 }
 0x15e   : > { %v530_v48 = vmul.f32 %v636_v45, %v529_v46 }
 0x160   : > { %v532_v49 = vadd.f32 %v531_v47, %v530_v48 }
 0x162   : > { %533 = vst [vmem:[%s1284_s13] sm:$0x1] %v532_v49 }
 0x163   : > { %974 = shalt.err (!%p971_p6)
}
 0x164   : > { %s975_s7 = scalar_lea.hbm %s1298_s26, 16  ;;  %s979_s10 = scalar_lea.hbm %s1352_s4, 32 }
 0x165   : > { %p976_p7 = scmp.ne.s32.totalorder %s1298_s26, %s975_s7  ;;  %p980_p0 = scmp.lt.u32.totalorder %s1298_s26, %s1352_s4 }
 0x166   : > { %p981_p2 = scmp.lt.u32.totalorder %s979_s10, %s975_s7  ;;  %p983_p8 = scmp.lt.u32.totalorder %s975_s7, %s1298_s26 }
 0x167   : > { %p977_p9 = pnand %p976_p7, %p1364_p10 }
 0x168   : > { %p982_p4 = por %p981_p2, %p980_p0 }
 0x169   : > { %p978_p12 = pneg %p977_p9 }
 0x16a   : > { %p984_p11 = por %p983_p8, %p982_p4 }
 0x16c   : > { %p985_p13 = pnand %p984_p11, %p978_p12 }
 0x16e   : > { %988 = shalt.err (!%p985_p13)
}
 0x16f   : > { %862 = dma.vmem_to_hbm [thread:$0]  (%p1364_p10), %s1300_s21, 16, %s1298_s26, %s535_s5  }
 0x170 PF: > { %p874_p1 = scmp.ge.s32.totalorder %s1043_s20, 2  ;;  %s559_s13 = sand.u32 1, %s1023_s15  }
 0x171   : > { %p1365_p3 = scmp.ne.s32.totalorder %s1358_s27, 0  ;;  %s560_s14 = scalar_lea.sflag [#allocation4], %s559_s13 }
 0x173   : > { %p869_p5 = pnand %p874_p1, %p1365_p3 }
 0x175   : > { %1018 = dma.done.wait (!%p869_p5), %s560_s14, 16  }
 0x176   : > { %1020 = vsyncadd (!%p869_p5), %s560_s14, 4294967280  ;;  %s18_s20 = sadd.s32 1, %s1043_s20   ;;  %s1366_s15 = smov %s1027_s16 }
 0x177   : > { %p15_p6 = scmp.ge.s32.totalorder %s18_s20, 4   ;;  %s1367_s16 = smov %s1031_s17 }
 0x178   : > { %s1368_s17 = smov %s1130_s28  ;;  %s1369_s18 = smov %s1039_s19 }
 0x179   : > { %s1370_s19 = smov %s1372_s23  ;;  %17 = sbr.rel (!%p15_p6) target bundleno = 5 (0x5), region = 83 }
 0x180   :  { %564 = vsyncpa [#allocation3], 1 }
 0x181   :  { %566 = vsyncpa [#allocation3 + $0x1], 1 }
 0x182   :  { %567 = vsyncpa [#allocation4], 1 }
 0x183   :  { %569 = vsyncpa [#allocation4 + $0x1], 1 }

</bundles_post_ra>
